<compile_context>
chip_gen: v5e
topology: v5e:2x2
jax: 0.10.0
libtpu: 0.0.40
codegen_flags: <defaults>
</compile_context>

<pallas_src>
import jax
import jax.numpy as jnp
import numpy as np
from jax.experimental import pallas as pl
from jax.experimental.pallas import tpu as pltpu


def _round_up(n: int, m: int) -> int:
    return ((n + m - 1) // m) * m


def scalar_embedding_kernel(x_ref, w_ref, o_ref):
    # x_ref : (T, 1)   per-row scalars (column vector)
    # w_ref : (1, E)   shared embedding weights (resident across the grid)
    # o_ref : (T, E)   output tile
    # Single broadcast multiply on the VPU: out[t, e] = x[t] * w[e]
    o_ref[...] = (x_ref[...] * w_ref[...]).astype(o_ref.dtype)


def scalar_embedding(x, weights, *, block_rows=8192, out_dtype=None):
    """x: (B, S) scalars; weights: (1, 1, E). Returns (B, S, E) = weights * x[..., None]."""
    B, S = x.shape
    E = weights.shape[-1]
    if out_dtype is None:
        # Follows input/weight promotion; the kernel is write-bound, so callers in a
        # bf16 pipeline should pass out_dtype=jnp.bfloat16 (or bf16 weights) for ~2x.
        out_dtype = jnp.result_type(x.dtype, weights.dtype)

    rows = B * S
    rows8 = _round_up(rows, 8)

    # Tile rows: multiple of 8 (sublane rule), as large as possible so per-step
    # output bytes dwarf the ~0.35 us fixed grid-step cost, but keep >= 2 grid
    # steps for megacore sharding when there is enough work to split.
    t_rows = min(_round_up(block_rows, 8), rows8)
    if rows8 > 2 * 1024:
        t_rows = min(t_rows, max(1024, _round_up(pl.cdiv(rows, 2), 8)))
    grid = pl.cdiv(rows, t_rows)

    x2 = x.reshape(rows, 1)          # (rows, 1) column; metadata-only reshape
    w2 = weights.reshape(1, E)       # (1, E) row vector

    out_itemsize = jnp.dtype(out_dtype).itemsize
    x_itemsize = jnp.dtype(x2.dtype).itemsize
    w_itemsize = jnp.dtype(w2.dtype).itemsize
    # Double-buffered VMEM budget: output tile + lane-padded (t_rows, 1) x tile + weights.
    vmem_need = (2 * t_rows * E * out_itemsize
                 + 2 * t_rows * 128 * x_itemsize
                 + 2 * E * w_itemsize)
    vmem_limit = int(min(48 * 2**20, max(32 * 2**20, 2 * vmem_need)))

    cost = pl.CostEstimate(
        flops=rows * E,
        transcendentals=0,
        bytes_accessed=rows * E * out_itemsize + rows * x_itemsize + E * w_itemsize,
    )

    out = pl.pallas_call(
        scalar_embedding_kernel,
        # Exact row count: Pallas handles the partial last block, so no pad + slice
        # (no extra HBM round trip) on ragged shapes.
        out_shape=jax.ShapeDtypeStruct((rows, E), out_dtype),
        grid_spec=pltpu.PrefetchScalarGridSpec(
            num_scalar_prefetch=0,
            grid=(grid,),
            in_specs=[
                pl.BlockSpec((t_rows, 1), lambda r: (r, 0)),   # per-tile scalars
                pl.BlockSpec((1, E),      lambda r: (0, 0)),   # shared weights (resident)
            ],
            out_specs=pl.BlockSpec((t_rows, E), lambda r: (r, 0)),
        ),
        compiler_params=pltpu.CompilerParams(
            dimension_semantics=("parallel",),   # shard grid steps across TCs (v7x)
            vmem_limit_bytes=vmem_limit,
        ),
        cost_estimate=cost,
    )(x2, w2)

    return out.reshape(B, S, E)


if __name__ == "__main__":
    # Module config: n_embd = 128 (from GPT2Config(n_embd=128, ...))
    n_embd = 128

    key = jax.random.PRNGKey(0)
    k_w, k_x = jax.random.split(key)

    # Deterministic parameter init, matching torch.randn(1,1,n_embd)*sqrt(1/n_embd)
    weights = jax.random.normal(k_w, (1, 1, n_embd), dtype=jnp.float32) * np.sqrt(
        1.0 / n_embd
    )

    # 1) Small shape implied by the module's forward: (batch=2, seq=8)
    B, S = 2, 8
    x = jax.random.normal(k_x, (B, S), dtype=jnp.float32)
    out = jax.block_until_ready(scalar_embedding(x, weights))
    ref = weights * x[:, :, None]
    np.testing.assert_allclose(np.asarray(out), np.asarray(ref), rtol=1e-6, atol=1e-6)

    # 2) Ragged rows with a single partial block (rows=21 vs block of 24)
    B2, S2 = 3, 7
    x2 = jax.random.normal(jax.random.PRNGKey(1), (B2, S2), dtype=jnp.float32)
    out2 = jax.block_until_ready(scalar_embedding(x2, weights))
    ref2 = weights * x2[:, :, None]
    np.testing.assert_allclose(np.asarray(out2), np.asarray(ref2), rtol=1e-6, atol=1e-6)

    # 3) Multi-step grid (>=2 parallel steps) with a partial last block (rows=2100)
    B3, S3 = 3, 700
    x3 = jax.random.normal(jax.random.PRNGKey(2), (B3, S3), dtype=jnp.float32)
    out3 = jax.block_until_ready(scalar_embedding(x3, weights))
    ref3 = weights * x3[:, :, None]
    np.testing.assert_allclose(np.asarray(out3), np.asarray(ref3), rtol=1e-6, atol=1e-6)

    print("KERNEL_OK")
</pallas_src>

<mosaic_0001>
module attributes {stable_mosaic.version = 11 : i64} {
  func.func @scalar_embedding_kernel(%arg0: i32, %arg1: memref<16x1xf32, #tpu.memory_space<vmem>>, %arg2: memref<1x128xf32, #tpu.memory_space<vmem>>, %arg3: memref<16x128xf32, #tpu.memory_space<vmem>>) attributes {dimension_semantics = [#tpu.dimension_semantics<parallel>], iteration_bounds = array<i64: 1>, scalar_prefetch = 0 : i64, scratch_operands = 0 : i64, tpu.core_type = #tpu.core_type<tc>, window_params = [{transform_indices = @transform_0, window_bounds = array<i64: 16, 1>}, {pipeline_mode = #tpu.pipeline_mode<synchronous>, transform_indices = @transform_1, window_bounds = array<i64: 1, 128>}, {transform_indices = @transform_2, window_bounds = array<i64: 16, 128>}]} {
    %c0 = arith.constant 0 : index
    %c0_0 = arith.constant 0 : index
    %0 = vector.load %arg1[%c0, %c0_0] : memref<16x1xf32, #tpu.memory_space<vmem>>, vector<16x1xf32>
    %c0_1 = arith.constant 0 : index
    %c0_2 = arith.constant 0 : index
    %1 = vector.load %arg2[%c0_1, %c0_2] : memref<1x128xf32, #tpu.memory_space<vmem>>, vector<1x128xf32>
    %2 = vector.broadcast %0 : vector<16x1xf32> to vector<16x128xf32>
    %3 = vector.broadcast %1 : vector<1x128xf32> to vector<16x128xf32>
    %4 = arith.mulf %2, %3 : vector<16x128xf32>
    %c0_3 = arith.constant 0 : index
    %c0_4 = arith.constant 0 : index
    %5 = vector.load %arg3[%c0_3, %c0_4] : memref<16x128xf32, #tpu.memory_space<vmem>>, vector<16x128xf32>
    tpu.vector_store %arg3[%c0_3, %c0_4], %4 {strides = array<i32>} : memref<16x128xf32, #tpu.memory_space<vmem>>, vector<16x128xf32>,
    return
  }
  func.func @transform_0(%arg0: i32) -> (i32, i32) {
    %c0_i32 = arith.constant 0 : i32
    %c0_i32_0 = arith.constant 0 : i32
    return %arg0, %c0_i32 : i32, i32
  }
  func.func @transform_1(%arg0: i32) -> (i32, i32) {
    %c0_i32 = arith.constant 0 : i32
    %c0_i32_0 = arith.constant 0 : i32
    %c0_i32_1 = arith.constant 0 : i32
    return %c0_i32, %c0_i32_0 : i32, i32
  }
  func.func @transform_2(%arg0: i32) -> (i32, i32) {
    %c0_i32 = arith.constant 0 : i32
    %c0_i32_0 = arith.constant 0 : i32
    return %arg0, %c0_i32 : i32, i32
  }
}

</mosaic_0001>

<bundles_post_ra>
// kernel: tpu_custom_call.1
= control target key start
LH: loop header
LB: loop body
LE: loop exit
PB: predicated region body
PF: predicated region fallthrough
CT: control target
= control target key end

     0   :  { %v82_v1 = vmov 0   ;;  %s113_s0 = inlined_call_operand.vmem [shape: f32[16,1], index: 0, kind: input, shape index: {}]   ;;  %s114_s1 = inlined_call_operand.vmem [shape: f32[1,128], index: 1, kind: input, shape index: {}]   ;;  %s115_s2 = inlined_call_operand.hbm [shape: f32[16,128], index: 2, kind: output, shape index: {}]  }
   0x1   :  { %v12_v0 = vld [vmem:[%s113_s0] sm:$0xff]  ;;  %54 = vset.pattern.permute.xlu0 %v82_v1 }
   0x2   :  { %7 = vsyncpa [#allocation3], 0  ;;  %17 = vperm.xlu0 %54, %v12_v0   ;;  %v13_v2 = vld [vmem:[%s113_s0 + $0x8] sm:$0xff]  ;;  %v55_v3 = vld [vmem:[%s114_s1] ss:$0 sm:$0xff]  ;;  %s83_s15 = smov [#allocation2]  }
   0x3   :  { %s36_s16 = sshll.u32 %s83_s15, 4  ;;  %s38_s19 = sshll.u32 %s115_s2, 4  ;;  %s37_s16 = int_to_ptr.vmem [resolvable:$true] %s36_s16  ;;  %s39_s19 = int_to_ptr.hbm [resolvable:$true] %s38_s19 }
   0x4   :  { %s84_s0 = smov 128   ;;  %s85_s20 = smov 8  }
   0xa   :  { %22 = vperm.xlu0 %54, %v13_v2  }
  0x74   :  { %v18_v4 = vpop.permute.xlu0 %17 }
  0x75   :  { %v28_v5 = vmul.f32 %v55_v3, %v18_v4 }
  0x77   :  { %30 = vst [vmem:[#allocation2] sm:$0xff] %v28_v5 }
  0x7c   :  { %v23_v6 = vpop.permute.xlu0 %22 }
  0x7d   :  { %v29_v7 = vmul.f32 %v55_v3, %v23_v6 }
  0x7f   :  { %31 = vst [vmem:[#allocation2 + $0x8] sm:$0xff] %v29_v7 }
  0x80   :  { %44 = dma.vmem_to_hbm [thread:$0]  %s37_s16, 256, %s39_s19, [#allocation3], %s84_s0, %s84_s0, %s85_s20  }
  0x81   :  { %80 = dma.done.wait [#allocation3], 256  }
  0x82   :  { %81 = vsyncadd [#allocation3], 4294967040 }
  0x83   :  { %49 = vsyncpa [#allocation3], 1 }

</bundles_post_ra>
